<compile_context>
chip_gen: v6e
topology: v6e:2x2x1
jax: 0.10.0
libtpu: 0.0.40
codegen_flags: <defaults>
</compile_context>

<pallas_src>
import functools

import jax
import jax.numpy as jnp
from jax.experimental import pallas as pl
from jax.experimental.pallas import tpu as pltpu


def _round_up(v, m):
    return ((v + m - 1) // m) * m


def _pow_static(x, p):
    """x**p for a static Python exponent, avoiding per-element EUP when possible."""
    if p == int(p) and p >= 1:
        # Exponentiation by squaring -> pure VALU multiplies.
        k = int(p)
        acc, base = None, x
        while k:
            if k & 1:
                acc = base if acc is None else acc * base
            k >>= 1
            if k:
                base = base * base
        return acc
    if 2.0 * p == int(2.0 * p) and p > 0:
        # Half-integer p: x**k * sqrt(x) (single EUP op per element, no log/exp).
        k = int(p)
        r = jnp.sqrt(x)
        return r if k == 0 else _pow_static(x, float(k)) * r
    # Generic non-integer p: exp(p*log(x)) on the EUP (slow path, rarely used).
    return jnp.power(x, p)


def _gem_kernel(x_ref, o_ref, *, p, eps, inv_hw):
    # x_ref: (TR, HW) tile in VMEM; o_ref: (1, TR) lane-dense row of results.
    x = x_ref[...].astype(jnp.float32)
    x = jnp.maximum(x, eps)                    # clamp(min=eps)
    xp = _pow_static(x, p)                     # x^p (VALU for integer p)
    s = jnp.sum(xp, axis=-1)                   # (TR,) cross-lane reduce (XLU)
    mean = s * inv_hw                          # avg_pool2d over full (H, W)
    if p != 1.0:
        mean = jnp.power(mean, 1.0 / p)        # one transcendental per ROW only
    o_ref[...] = mean.reshape(1, -1).astype(o_ref.dtype)


def gem_pallas(x, p=3, eps=1e-6, row_tile=None):
    """x: (N, C, H, W) float array -> (N, C, 1, 1)."""
    N, C, H, W = x.shape
    R = N * C
    HW = H * W
    x2 = x.reshape(R, HW)

    itemsize = jnp.dtype(x.dtype).itemsize
    pack = max(8, 32 // itemsize)          # sublane packing: 8 f32, 16 bf16, 32 i8
    hw_lanes = _round_up(HW, 128)          # VMEM pads the last dim to 128 lanes

    if row_tile is None:
        # ~4 MiB of f32 compute per grid step: amortizes the ~0.35 us per-step
        # overhead and sits near the HBM roofline, while double-buffered input
        # tiles + the block's f32 intermediates stay well under the 32 MiB
        # scoped-VMEM window on every generation (v7x: 64 MiB physical).
        target_rows = max(pack, (4 * 1024 * 1024) // (hw_lanes * 4))
        # Keep >= 4 grid steps when there's enough work so v7x's two
        # TensorCores both get "parallel" slices and DMA/compute overlap.
        steps_cap = _round_up(pl.cdiv(R, 4), pack)
        row_tile = min(target_rows, steps_cap)

    if row_tile >= R:
        TR = R                             # single step; block = full array dims
    else:
        TR = max(pack, (int(row_tile) // pack) * pack)
    G = pl.cdiv(R, TR)                     # partial tail block handled by Pallas
                                           # (no jnp.pad -> no extra HBM pass)

    kernel = functools.partial(
        _gem_kernel, p=float(p), eps=float(eps), inv_hw=1.0 / float(HW)
    )

    out = pl.pallas_call(
        kernel,
        # Lane-dense output: one (1, TR) row per grid step -> unmasked stores
        # and only ~TR*8*itemsize bytes of VMEM per output buffer.
        out_shape=jax.ShapeDtypeStruct((G, TR), x.dtype),
        grid_spec=pltpu.PrefetchScalarGridSpec(
            num_scalar_prefetch=0,
            grid=(G,),
            in_specs=[pl.BlockSpec((TR, HW), lambda i: (i, 0))],
            out_specs=pl.BlockSpec((1, TR), lambda i: (i, 0)),
        ),
        compiler_params=pltpu.CompilerParams(
            dimension_semantics=("parallel",),
            vmem_limit_bytes=32 * 1024 * 1024,
        ),
        cost_estimate=pl.CostEstimate(
            flops=4 * R * HW,
            transcendentals=2 * R,
            bytes_accessed=R * HW * itemsize + G * TR * itemsize,
        ),
    )(x2)

    # Drop lanes produced by the (garbage-filled) partial tail block.
    return out.reshape(G * TR)[:R].reshape(N, C, 1, 1)


class GeM:
    """Mirror of the PyTorch module (p_trainable=False -> p is a plain scalar)."""

    def __init__(self, p=3, eps=1e-6, p_trainable=False):
        # TODO(synk): p_trainable=True would need p as an SMEM scalar + custom_vjp
        # for gradients; forward math is identical, so keep the static scalar here.
        self.p = float(p)
        self.eps = float(eps)

    def __call__(self, x):
        return gem_pallas(x, p=self.p, eps=self.eps)


def _gem_ref(x, p=3.0, eps=1e-6):
    xf = x.astype(jnp.float32)
    m = jnp.mean(jnp.maximum(xf, eps) ** p, axis=(2, 3), keepdims=True)
    return (m ** (1.0 / p)).astype(x.dtype)


if __name__ == "__main__":
    mod = GeM(p=3, eps=1e-6)

    # Main check (multiple-of-8 row count, single grid step).
    N, C, H, W = 2, 4, 16, 16
    x = jax.random.normal(jax.random.PRNGKey(0), (N, C, H, W), dtype=jnp.float32)
    y = jax.block_until_ready(mod(x))
    ref = _gem_ref(x, 3.0, 1e-6)
    assert y.shape == (N, C, 1, 1), y.shape
    assert jnp.allclose(y, ref, rtol=1e-5, atol=1e-5), float(jnp.max(jnp.abs(y - ref)))

    # Odd row count, HW < 128 lanes (full-array block path).
    x2 = jax.random.normal(jax.random.PRNGKey(1), (1, 5, 7, 7), dtype=jnp.float32)
    y2 = jax.block_until_ready(mod(x2))
    ref2 = _gem_ref(x2, 3.0, 1e-6)
    assert y2.shape == (1, 5, 1, 1), y2.shape
    assert jnp.allclose(y2, ref2, rtol=1e-5, atol=1e-5), float(jnp.max(jnp.abs(y2 - ref2)))

    # Multi-step grid with a PARTIAL tail block (R=111, TR=32, 4 steps) — the
    # no-pad path the perf review asked for.
    x3 = jax.random.normal(jax.random.PRNGKey(2), (3, 37, 8, 8), dtype=jnp.float32)
    y3 = jax.block_until_ready(mod(x3))
    ref3 = _gem_ref(x3, 3.0, 1e-6)
    assert y3.shape == (3, 37, 1, 1), y3.shape
    assert jnp.allclose(y3, ref3, rtol=1e-5, atol=1e-5), float(jnp.max(jnp.abs(y3 - ref3)))

    # bf16 activations (halves HBM bytes; f32 accumulation inside the kernel).
    x4 = jax.random.normal(jax.random.PRNGKey(3), (2, 24, 16, 16), dtype=jnp.bfloat16)
    y4 = jax.block_until_ready(mod(x4))
    ref4 = _gem_ref(x4, 3.0, 1e-6)
    assert y4.shape == (2, 24, 1, 1), y4.shape
    assert jnp.allclose(y4.astype(jnp.float32), ref4.astype(jnp.float32),
                        rtol=2e-2, atol=2e-2)

    print("KERNEL_OK")
</pallas_src>

<mosaic_0001>
module attributes {stable_mosaic.version = 11 : i64} {
  func.func @_gem_kernel(%arg0: i32, %arg1: memref<8x256xf32, #tpu.memory_space<vmem>>, %arg2: memref<1x8xf32, #tpu.memory_space<vmem>>) attributes {dimension_semantics = [#tpu.dimension_semantics<parallel>], iteration_bounds = array<i64: 1>, scalar_prefetch = 0 : i64, scratch_operands = 0 : i64, tpu.core_type = #tpu.core_type<tc>, window_params = [{transform_indices = @transform_0, window_bounds = array<i64: 8, 256>}, {transform_indices = @transform_1, window_bounds = array<i64: 1, 8>}]} {
    %c0 = arith.constant 0 : index
    %c0_0 = arith.constant 0 : index
    %0 = vector.load %arg1[%c0, %c0_0] : memref<8x256xf32, #tpu.memory_space<vmem>>, vector<8x256xf32>
    %cst = arith.constant 9.99999997E-7 : f32
    %1 = vector.broadcast %cst : f32 to vector<8x256xf32>
    %2 = arith.maximumf %0, %1 : vector<8x256xf32>
    %3 = arith.mulf %2, %2 : vector<8x256xf32>
    %4 = arith.mulf %2, %3 : vector<8x256xf32>
    %cst_1 = arith.constant dense<0.000000e+00> : vector<8xf32>
    %5 = vector.multi_reduction <add>, %4, %cst_1 [1] : vector<8x256xf32> to vector<8xf32>
    %cst_2 = arith.constant 3.906250e-03 : f32
    %6 = vector.broadcast %cst_2 : f32 to vector<8xf32>
    %7 = arith.mulf %5, %6 : vector<8xf32>
    %cst_3 = arith.constant 0.333333343 : f32
    %8 = vector.broadcast %cst_3 : f32 to vector<8xf32>
    %9 = math.powf %7, %8 : vector<8xf32>
    %10 = vector.shape_cast %9 : vector<8xf32> to vector<1x8xf32>
    %c0_4 = arith.constant 0 : index
    %c0_5 = arith.constant 0 : index
    %11 = vector.load %arg2[%c0_4, %c0_5] : memref<1x8xf32, #tpu.memory_space<vmem>>, vector<1x8xf32>
    tpu.vector_store %arg2[%c0_4, %c0_5], %10 {strides = array<i32>} : memref<1x8xf32, #tpu.memory_space<vmem>>, vector<1x8xf32>,
    return
  }
  func.func @transform_0(%arg0: i32) -> (i32, i32) {
    %c0_i32 = arith.constant 0 : i32
    %c0_i32_0 = arith.constant 0 : i32
    return %arg0, %c0_i32 : i32, i32
  }
  func.func @transform_1(%arg0: i32) -> (i32, i32) {
    %c0_i32 = arith.constant 0 : i32
    %c0_i32_0 = arith.constant 0 : i32
    return %arg0, %c0_i32 : i32, i32
  }
}

</mosaic_0001>

<bundles_post_ra>
// kernel: tpu_custom_call.1
= control target key start
LH: loop header
LB: loop body
LE: loop exit
PB: predicated region body
PF: predicated region fallthrough
CT: control target
= control target key end

     0   :  { %6 = vsyncpa [#allocation3], 0  ;;  %s145_s0 = inlined_call_operand.hbm [shape: f32[8,256], index: 0, kind: input, shape index: {}]   ;;  %s146_s1 = inlined_call_operand.hbm [shape: f32[1,8], index: 1, kind: output, shape index: {}]  }
   0x1   :  { %7 = vsyncpa [#allocation4], 0  ;;  %s127_s6 = smov [#allocation2]  }
   0x2   :  { %s14_s7 = sshll.u32 %s127_s6, 4  ;;  %s15_s7 = int_to_ptr.vmem [resolvable:$true] %s14_s7 }
   0x3   :  { %s91_s8 = scalar_lea.vmem %s15_s7, 256  ;;  %p96_p1 = scmp.lt.s32.totalorder %s15_s7, %s15_s7 }
   0x4   :  { %p92_p0 = scmp.ne.s32.totalorder %s15_s7, %s91_s8  ;;  %p97_p2 = scmp.lt.s32.totalorder %s91_s8, %s91_s8 }
   0x6   :  { %p98_p3 = por %p97_p2, %p96_p1 }
   0x8   :  { %p99_p4 = pnand %p98_p3, %p92_p0 }
   0xa   :  { %102 = shalt.err (!%p99_p4)
}
   0xb   :  { %17 = dma.hbm_to_vmem [thread:$0]  %s145_s0, 256, %s15_s7, [#allocation3]  }
   0xc   :  { %123 = dma.done.wait [#allocation3], 256  }
   0xd   :  { %124 = vsyncadd [#allocation3], 4294967040  ;;  %v21_v0 = vld [vmem:[#allocation2] sm:$0xff]  ;;  %v22_v1 = vld [vmem:[#allocation2 + $0x8] sm:$0xff]  ;;  %v35_v14 = vlaneseq  ;;  %s128_s0 = smov [#allocation5]   ;;  %vm42_vm5 = vcmask 57344  }
   0xe   :  { %v23_v2 = vmax.f32 %v21_v0, 1e-06  ;;  %v24_v3 = vmax.f32 %v22_v1, 1e-06  ;;  %s50_s11 = sshll.u32 %s128_s0, 4  ;;  %s51_s11 = int_to_ptr.vmem [resolvable:$true] %s50_s11 }
   0xf   :  { %v36_v17 = vand.u32 127, %v35_v14  ;;  %v38_v18 = vshrl.u32 %v35_v14, 7  ;;  %s103_s12 = scalar_lea.vmem %s51_s11, 16  ;;  %s107_s13 = scalar_lea.vmem %s51_s11, 32 }
  0x10   :  { %v25_v4 = vmul.f32 %v23_v2, %v23_v2  ;;  %v26_v5 = vmul.f32 %v24_v3, %v24_v3  ;;  %p104_p5 = scmp.ne.s32.totalorder %s51_s11, %s103_s12  ;;  %p108_p6 = scmp.lt.s32.totalorder %s51_s11, %s51_s11 }
  0x11   :  { %v39_v22 = vsub.s32 %v36_v17, %v38_v18  ;;  %p109_p7 = scmp.lt.s32.totalorder %s107_s13, %s103_s12 }
  0x12   :  { %v27_v6 = vmul.f32 %v25_v4, %v23_v2  ;;  %v28_v7 = vmul.f32 %v26_v5, %v24_v3 }
  0x13   :  { %p110_p8 = por %p109_p7, %p108_p6 }
  0x14   :  { %v29_v8 = vadd.f32 %v28_v7, %v27_v6 }
  0x15   :  { %p111_p9 = pnand %p110_p8, %p104_p5 }
  0x16   :  { %30 = vadd.xlane.f32.xlu0 %v29_v8 }
  0x9f   :  { %v31_v9 = vpop.xlane.xlu0 %30 }
  0xa0   :  { %v32_v10 = vmul.f32 0.00390625, %v31_v9 }
  0xa2   :  { %v61_v11 = vand.u32 2147483647, %v32_v10  ;;  %v65_v15 = vand.u32 2147483648, %v32_v10  ;;  %vm60_vm2 = vcmp.lt.f32.partialorder %v32_v10, 0.0  ;;  %vm59_vm3 = vcmp.eq.f32.partialorder %v32_v10, 0.0 }
  0xa4   :  { %79 = vlog2.f32 %v61_v11  ;;  %vm69_vm0 = vweird.f32 %v61_v11  ;;  %vm71_vm1 = vcmp.eq.f32.partialorder %v61_v11, 0.0  ;;  %vm62_vm4 = vcmp.eq.f32.partialorder %v61_v11, inf }
  0xb1   :  { %v80_v12 = vpop.eup %79 }
  0xb2   :  { %v66_v13 = vmul.f32 0.33333334, %v80_v12 }
  0xb4   :  { %81 = vpow2.f32 %v66_v13 }
  0xc1   :  { %v82_v16 = vpop.eup %81 }
  0xc2   :  { %v68_v19 = vor.u32 %v82_v16, %v65_v15 }
  0xc4   :  { %v70_v20 = vsel %vm69_vm0, %v32_v10, %v68_v19 }
  0xc5   :  { %v73_v21 = vsel %vm71_vm1, %v65_v15, %v70_v20 }
  0xc6   :  { %v74_v23 = vsel %vm60_vm2, nan, %v73_v21 }
  0xc7   :  { %v75_v24 = vsel %vm59_vm3, 0.0, %v74_v23 }
  0xc8   :  { %v76_v25 = vsel %vm62_vm4, inf, %v75_v24 }
  0xc9   :  { %v40_v26 = vrot.slane %v76_v25, %v39_v22 }
  0xcb   :  { %43 = vst.msk [vmem:[#allocation5] sm:$0x1] %vm42_vm5, %v40_v26 }
  0xcc   :  { %114 = shalt.err (!%p111_p9)
}
  0xcd   :  { %53 = dma.vmem_to_hbm [thread:$0]  %s51_s11, 16, %s146_s1, [#allocation4]  }
  0xce   :  { %125 = dma.done.wait [#allocation4], 16  }
  0xcf   :  { %126 = vsyncadd [#allocation4], 4294967280 }
  0xd0   :  { %57 = vsyncpa [#allocation3], 1 }
  0xd1   :  { %58 = vsyncpa [#allocation4], 1 }

</bundles_post_ra>
